<compile_context>
chip_gen: v6e
topology: v6e:2x2x1
jax: 0.10.0
libtpu: 0.0.40
codegen_flags: <defaults>
</compile_context>

<pallas_src>
import functools

import jax
import jax.numpy as jnp
from jax.experimental import pallas as pl
from jax.experimental.pallas import tpu as pltpu


def _round_up(v, m):
    return (v + m - 1) // m * m


def _fit(dim, desired):
    """Pick (tile, padded_dim) for one matmul dimension.

    Small dims use a single full-extent block (always legal per the (8,128)
    rule); large dims use an MXU-friendly tile (multiple of 8 and 128) and the
    dim is padded up to a multiple of it, so there is never a ragged block or a
    full-extent fallback whose double-buffered footprint could exceed VMEM.
    """
    if dim <= desired:
        return dim, dim
    return desired, _round_up(dim, desired)


# ---------------------------------------------------------------------------
# Tiled linear: y = x @ w (+ b).  x:(M,K) bf16, w:(K,N) bf16, b:(1,N) f32.
# ---------------------------------------------------------------------------
def _linear_bias_kernel(x_ref, w_ref, b_ref, o_ref, acc_ref):
    @pl.when(pl.program_id(2) == 0)
    def _():
        acc_ref[...] = jnp.zeros_like(acc_ref)

    acc_ref[...] += jnp.dot(x_ref[...], w_ref[...],
                            preferred_element_type=jnp.float32)

    @pl.when(pl.program_id(2) == pl.num_programs(2) - 1)
    def _():
        o_ref[...] = (acc_ref[...] + b_ref[...]).astype(o_ref.dtype)


def _linear_nobias_kernel(x_ref, w_ref, o_ref, acc_ref):
    @pl.when(pl.program_id(2) == 0)
    def _():
        acc_ref[...] = jnp.zeros_like(acc_ref)

    acc_ref[...] += jnp.dot(x_ref[...], w_ref[...],
                            preferred_element_type=jnp.float32)

    @pl.when(pl.program_id(2) == pl.num_programs(2) - 1)
    def _():
        o_ref[...] = acc_ref[...].astype(o_ref.dtype)


def linear(x, w, b=None, *, out_dtype=None, tm=256, tk=512, tn=512):
    """(M, K) @ (K, N) + (N,) with bf16 MXU operands and f32 accumulation.

    Tile footprint (bf16 ops + f32 acc, double-buffered) is ~3 MiB, well under
    the v5e 16 MiB scoped default and v7x's 64 MiB physical VMEM.
    """
    M, K = x.shape
    K2, N = w.shape
    assert K == K2
    out_dtype = out_dtype or x.dtype

    xb = x.astype(jnp.bfloat16)
    wb = w.astype(jnp.bfloat16)

    tm, Mp = _fit(M, tm)
    tk, Kp = _fit(K, tk)
    tn, Np = _fit(N, tn)

    if (Mp, Kp) != (M, K):
        xb = jnp.pad(xb, ((0, Mp - M), (0, Kp - K)))
    if (Kp, Np) != (K, N):
        wb = jnp.pad(wb, ((0, Kp - K), (0, Np - N)))

    grid = (Mp // tm, Np // tn, Kp // tk)
    cost = pl.CostEstimate(
        flops=2 * M * N * K,
        transcendentals=0,
        bytes_accessed=(2 * (M * K + K * N) + 4 * N
                        + M * N * jnp.dtype(out_dtype).itemsize),
    )

    x_spec = pl.BlockSpec((tm, tk), lambda i, j, k: (i, k))
    w_spec = pl.BlockSpec((tk, tn), lambda i, j, k: (k, j))
    o_spec = pl.BlockSpec((tm, tn), lambda i, j, k: (i, j))

    if b is not None:
        b2d = b.astype(jnp.float32).reshape(1, N)
        if Np != N:
            b2d = jnp.pad(b2d, ((0, 0), (0, Np - N)))
        kernel = _linear_bias_kernel
        in_specs = [x_spec, w_spec,
                    pl.BlockSpec((1, tn), lambda i, j, k: (0, j))]
        args = (xb, wb, b2d)
    else:
        kernel = _linear_nobias_kernel
        in_specs = [x_spec, w_spec]
        args = (xb, wb)

    out = pl.pallas_call(
        kernel,
        out_shape=jax.ShapeDtypeStruct((Mp, Np), out_dtype),
        grid_spec=pltpu.PrefetchScalarGridSpec(
            num_scalar_prefetch=0,
            grid=grid,
            in_specs=in_specs,
            out_specs=o_spec,
            scratch_shapes=[pltpu.VMEM((tm, tn), jnp.float32)],
        ),
        compiler_params=pltpu.CompilerParams(
            dimension_semantics=("parallel", "parallel", "arbitrary")),
        cost_estimate=cost,
    )(*args)

    if (Mp, Np) != (M, N):
        out = out[:M, :N]
    return out


# ---------------------------------------------------------------------------
# Fused attention core: one batch element per grid step, all heads inside.
# Input block (1, N, 3C) bf16, output block (1, N, C) -> lane-dense writeback.
# ---------------------------------------------------------------------------
def _attn_kernel(qkv_ref, o_ref, *, num_heads, scale):
    C = qkv_ref.shape[2] // 3
    d = C // num_heads
    for h in range(num_heads):            # static unroll; heads are contiguous columns
        q = qkv_ref[0, :, h * d:(h + 1) * d]
        k = qkv_ref[0, :, C + h * d:C + (h + 1) * d]
        v = qkv_ref[0, :, 2 * C + h * d:2 * C + (h + 1) * d]

        # Scale q (N*d multiplies) instead of the (N,N) scores; keep scaling in f32.
        q = (q.astype(jnp.float32) * scale).astype(jnp.bfloat16)
        k = k.astype(jnp.bfloat16)
        v = v.astype(jnp.bfloat16)

        # scores = q @ k^T : contract head_dim of both operands (no transpose).
        s = jax.lax.dot_general(q, k, (((1,), (1,)), ((), ())),
                                preferred_element_type=jnp.float32)    # (N, N) f32

        # Softmax in f32 (VPU/EUP); normalization deferred past the PV matmul.
        m = jnp.max(s, axis=-1, keepdims=True)
        p = jnp.exp(s - m)
        denom = jnp.sum(p, axis=-1, keepdims=True)

        o = jnp.dot(p.astype(jnp.bfloat16), v,
                    preferred_element_type=jnp.float32)                # (N, d) f32
        o = o * pl.reciprocal(denom, approx=True)                      # EUP, ~free

        o_ref[0, :, h * d:(h + 1) * d] = o.astype(o_ref.dtype)


def mha_fused(qkv, num_heads, scale, *, out_dtype):
    """qkv: (B, N, 3C) -> concat_h softmax(q_h k_h^T * scale) v_h : (B, N, C)."""
    B, N, C3 = qkv.shape
    C = C3 // 3
    d = C // num_heads
    cost = pl.CostEstimate(
        flops=4 * B * num_heads * N * N * d,
        transcendentals=B * num_heads * N * N,
        bytes_accessed=B * N * (C3 + C) * 2,
    )
    kernel = functools.partial(_attn_kernel, num_heads=num_heads, scale=scale)
    return pl.pallas_call(
        kernel,
        out_shape=jax.ShapeDtypeStruct((B, N, C), out_dtype),
        grid_spec=pltpu.PrefetchScalarGridSpec(
            num_scalar_prefetch=0,
            grid=(B,),
            in_specs=[pl.BlockSpec((1, N, C3), lambda b: (b, 0, 0))],
            out_specs=pl.BlockSpec((1, N, C), lambda b: (b, 0, 0)),
        ),
        compiler_params=pltpu.CompilerParams(
            dimension_semantics=("parallel",)),
        cost_estimate=cost,
    )(qkv)


# ---------------------------------------------------------------------------
# Module wrapper mirroring the PyTorch Attention nn.Module forward.
# ---------------------------------------------------------------------------
class Attention:
    def __init__(self, dim, num_heads=8, qkv_bias=False, qk_scale=None,
                 atte_drop_ration=0.0, proj_drop_ration=0.0, *,
                 key, dtype=jnp.float32):
        assert dim % num_heads == 0
        self.dim = dim
        self.num_heads = num_heads
        head_dim = dim // num_heads
        self.scale = qk_scale or head_dim ** (-0.5)
        # TODO(synk): attn_drop / proj_drop (nn.Dropout) are identity at the
        # default drop ratio 0.0 (and in eval mode); dropout masks not applied.
        k1, k2, k3, k4 = jax.random.split(key, 4)
        init = 0.02
        # (in_features, out_features) layout -> every projection is x @ W + b.
        self.w_qkv = jax.random.normal(k1, (dim, 3 * dim), dtype) * init
        self.w_proj = jax.random.normal(k2, (dim, dim), dtype) * init
        self.b_qkv = (jax.random.normal(k3, (3 * dim,), dtype) * init
                      if qkv_bias else None)
        self.b_proj = (jax.random.normal(k4, (dim,), dtype) * init
                       if qkv_bias else None)

    def __call__(self, x):
        B, N, C = x.shape
        # 1) fused qkv projection; bf16 activations halve HBM traffic downstream.
        qkv = linear(x.reshape(B * N, C), self.w_qkv, self.b_qkv,
                     out_dtype=jnp.bfloat16)                       # (B*N, 3C)
        # 2) fused attention: only a free contiguous reshape, no transposes.
        #    Heads land side-by-side along C in head order == torch's
        #    (attn @ v).transpose(1,2).reshape(B,N,C).
        o = mha_fused(qkv.reshape(B, N, 3 * C), self.num_heads, self.scale,
                      out_dtype=jnp.bfloat16)                      # (B, N, C)
        # 3) output projection back to the input dtype.
        out = linear(o.reshape(B * N, C), self.w_proj, self.b_proj,
                     out_dtype=x.dtype)                            # (B*N, C)
        return out.reshape(B, N, C)


# ---------------------------------------------------------------------------
# Pure-JAX f32 reference of the same forward (same weights).
# ---------------------------------------------------------------------------
def reference(x, mod):
    B, N, C = x.shape
    H = mod.num_heads
    d = C // H
    qkv = x @ mod.w_qkv
    if mod.b_qkv is not None:
        qkv = qkv + mod.b_qkv
    qkv = qkv.reshape(B, N, 3, H, d).transpose(2, 0, 3, 1, 4)
    q, k, v = qkv[0], qkv[1], qkv[2]
    s = jnp.einsum('bhnd,bhmd->bhnm', q, k) * mod.scale
    p = jax.nn.softmax(s, axis=-1)
    o = jnp.einsum('bhnm,bhmd->bhnd', p, v)
    o = o.transpose(0, 2, 1, 3).reshape(B, N, C)
    out = o @ mod.w_proj
    if mod.b_proj is not None:
        out = out + mod.b_proj
    return out


if __name__ == "__main__":
    key = jax.random.PRNGKey(0)
    k_x, k_w = jax.random.split(key)

    # (B, N, C) = (batch=2, tokens=8, hidden=32), 4 heads -> head_dim=8.
    B, N, C, H = 2, 8, 32, 4
    x = jax.random.normal(k_x, (B, N, C), dtype=jnp.float32)

    attn = Attention(C, num_heads=H, qkv_bias=True, key=k_w)

    out = jax.block_until_ready(attn(x))
    ref = reference(x, attn)

    assert out.shape == (B, N, C) and out.dtype == x.dtype
    err = float(jnp.max(jnp.abs(out - ref)))
    # bf16 MXU operands + bf16 intermediates + approx reciprocal -> relaxed tol.
    assert jnp.allclose(out, ref, atol=1e-2, rtol=1e-2), f"max abs err {err}"

    print("KERNEL_OK")
</pallas_src>

<mosaic_0001>
module attributes {stable_mosaic.version = 11 : i64} {
  func.func @_linear_bias_kernel(%arg0: i32, %arg1: i32, %arg2: i32, %arg3: memref<16x32xbf16, #tpu.memory_space<vmem>>, %arg4: memref<32x96xbf16, #tpu.memory_space<vmem>>, %arg5: memref<1x96xf32, #tpu.memory_space<vmem>>, %arg6: memref<16x96xbf16, #tpu.memory_space<vmem>>, %arg7: memref<16x96xf32, #tpu.memory_space<vmem>>) attributes {dimension_semantics = [#tpu.dimension_semantics<parallel>, #tpu.dimension_semantics<parallel>, #tpu.dimension_semantics<arbitrary>], iteration_bounds = array<i64: 1, 1, 1>, scalar_prefetch = 0 : i64, scratch_operands = 1 : i64, tpu.core_type = #tpu.core_type<tc>, window_params = [{transform_indices = @transform_0, window_bounds = array<i64: 16, 32>}, {transform_indices = @transform_1, window_bounds = array<i64: 32, 96>}, {transform_indices = @transform_2, window_bounds = array<i64: 1, 96>}, {transform_indices = @transform_3, window_bounds = array<i64: 16, 96>}]} {
    %c0_i32 = arith.constant 0 : i32
    %0 = arith.cmpi eq, %arg2, %c0_i32 : i32
    %1 = arith.extui %0 : i1 to i32
    %c0_i32_0 = arith.constant 0 : i32
    %2 = arith.cmpi ne, %1, %c0_i32_0 : i32
    scf.if %2 {
      %cst_10 = arith.constant 0.000000e+00 : f32
      %12 = vector.broadcast %cst_10 : f32 to vector<16x96xf32>
      %c0_11 = arith.constant 0 : index
      %c0_12 = arith.constant 0 : index
      %13 = vector.load %arg7[%c0_11, %c0_12] : memref<16x96xf32, #tpu.memory_space<vmem>>, vector<16x96xf32>
      tpu.vector_store %arg7[%c0_11, %c0_12], %12 {strides = array<i32>} : memref<16x96xf32, #tpu.memory_space<vmem>>, vector<16x96xf32>,
    } else {
    }
    %c0 = arith.constant 0 : index
    %c0_1 = arith.constant 0 : index
    %3 = vector.load %arg7[%c0, %c0_1] : memref<16x96xf32, #tpu.memory_space<vmem>>, vector<16x96xf32>
    %c0_2 = arith.constant 0 : index
    %c0_3 = arith.constant 0 : index
    %4 = vector.load %arg3[%c0_2, %c0_3] : memref<16x32xbf16, #tpu.memory_space<vmem>>, vector<16x32xbf16>
    %c0_4 = arith.constant 0 : index
    %c0_5 = arith.constant 0 : index
    %5 = vector.load %arg4[%c0_4, %c0_5] : memref<32x96xbf16, #tpu.memory_space<vmem>>, vector<32x96xbf16>
    %cst = arith.constant dense<0.000000e+00> : vector<16x96xf32>
    %6 = tpu.matmul %4, %5, %cst {dimension_numbers = #tpu.dot_dimension_numbers<[1], [0], [0], [1], [0, 0, 1, 1], [], []>} : vector<16x32xbf16>, vector<32x96xbf16>, vector<16x96xf32> -> vector<16x96xf32>
    %7 = arith.addf %3, %6 : vector<16x96xf32>
    %c0_6 = arith.constant 0 : index
    %c0_7 = arith.constant 0 : index
    %8 = vector.load %arg7[%c0_6, %c0_7] : memref<16x96xf32, #tpu.memory_space<vmem>>, vector<16x96xf32>
    tpu.vector_store %arg7[%c0_6, %c0_7], %7 {strides = array<i32>} : memref<16x96xf32, #tpu.memory_space<vmem>>, vector<16x96xf32>,
    %c0_i32_8 = arith.constant 0 : i32
    %9 = arith.cmpi eq, %arg2, %c0_i32_8 : i32
    %10 = arith.extui %9 : i1 to i32
    %c0_i32_9 = arith.constant 0 : i32
    %11 = arith.cmpi ne, %10, %c0_i32_9 : i32
    scf.if %11 {
      %c0_10 = arith.constant 0 : index
      %c0_11 = arith.constant 0 : index
      %12 = vector.load %arg7[%c0_10, %c0_11] : memref<16x96xf32, #tpu.memory_space<vmem>>, vector<16x96xf32>
      %c0_12 = arith.constant 0 : index
      %c0_13 = arith.constant 0 : index
      %13 = vector.load %arg5[%c0_12, %c0_13] : memref<1x96xf32, #tpu.memory_space<vmem>>, vector<1x96xf32>
      %14 = vector.broadcast %13 : vector<1x96xf32> to vector<16x96xf32>
      %15 = arith.addf %12, %14 : vector<16x96xf32>
      %16 = arith.truncf %15 : vector<16x96xf32> to vector<16x96xbf16>
      %c0_14 = arith.constant 0 : index
      %c0_15 = arith.constant 0 : index
      %17 = vector.load %arg6[%c0_14, %c0_15] : memref<16x96xbf16, #tpu.memory_space<vmem>>, vector<16x96xbf16>
      tpu.vector_store %arg6[%c0_14, %c0_15], %16 {strides = array<i32>} : memref<16x96xbf16, #tpu.memory_space<vmem>>, vector<16x96xbf16>,
    } else {
    }
    return
  }
  func.func @transform_0(%arg0: i32, %arg1: i32, %arg2: i32) -> (i32, i32) {
    %c0_i32 = arith.constant 0 : i32
    return %arg0, %arg2 : i32, i32
  }
  func.func @transform_1(%arg0: i32, %arg1: i32, %arg2: i32) -> (i32, i32) {
    %c0_i32 = arith.constant 0 : i32
    return %arg2, %arg1 : i32, i32
  }
  func.func @transform_2(%arg0: i32, %arg1: i32, %arg2: i32) -> (i32, i32) {
    %c0_i32 = arith.constant 0 : i32
    %c0_i32_0 = arith.constant 0 : i32
    return %c0_i32, %arg1 : i32, i32
  }
  func.func @transform_3(%arg0: i32, %arg1: i32, %arg2: i32) -> (i32, i32) {
    %c0_i32 = arith.constant 0 : i32
    return %arg0, %arg1 : i32, i32
  }
}

</mosaic_0001>

<bundles_post_ra>
// kernel: tpu_custom_call.1
= control target key start
LH: loop header
LB: loop body
LE: loop exit
PB: predicated region body
PF: predicated region fallthrough
CT: control target
= control target key end

     0   :  { %8 = vsyncpa [#allocation4], 0  ;;  %s317_s0 = inlined_call_operand.hbm [shape: bf16[16,32], index: 0, kind: input, shape index: {}]   ;;  %s318_s1 = inlined_call_operand.hbm [shape: bf16[32,96], index: 1, kind: input, shape index: {}]   ;;  %s319_s2 = inlined_call_operand.vmem [shape: f32[1,96], index: 2, kind: input, shape index: {}]   ;;  %s320_s3 = inlined_call_operand.hbm [shape: bf16[16,96], index: 3, kind: output, shape index: {}]  }
   0x1   :  { %9 = vsyncpa [#allocation7], 0 }
   0x2   :  { %10 = vsyncpa [#allocation5], 0  ;;  %s265_s12 = smov [#allocation3]  }
   0x3   :  { %s16_s13 = sshll.u32 %s265_s12, 4  ;;  %s17_s13 = int_to_ptr.vmem [resolvable:$true] %s16_s13 }
   0x4   :  { %s207_s14 = scalar_lea.vmem %s17_s13, 128  ;;  %p212_p1 = scmp.lt.s32.totalorder %s17_s13, %s17_s13 }
   0x5   :  { %p208_p0 = scmp.ne.s32.totalorder %s17_s13, %s207_s14  ;;  %p213_p2 = scmp.lt.s32.totalorder %s207_s14, %s207_s14 }
   0x7   :  { %p214_p3 = por %p213_p2, %p212_p1 }
   0x9   :  { %p215_p4 = pnand %p214_p3, %p208_p0 }
   0xb   :  { %218 = shalt.err (!%p215_p4)
}
   0xc   :  { %s266_s15 = smov 64   ;;  %s267_s16 = smov 4  }
   0xd   :  { %22 = dma.hbm_to_vmem [thread:$0]  %s317_s0, 128, %s17_s13, [#allocation4], %s266_s15, %s266_s15, %s267_s16  }
   0xe   :  { %s268_s19 = smov [#allocation6]  }
   0xf   :  { %s28_s20 = sshll.u32 %s268_s19, 4  ;;  %s29_s20 = int_to_ptr.vmem [resolvable:$true] %s28_s20 }
  0x10   :  { %s227_s21 = scalar_lea.vmem %s29_s20, 256  ;;  %p232_p6 = scmp.lt.s32.totalorder %s29_s20, %s29_s20 }
  0x11   :  { %p228_p5 = scmp.ne.s32.totalorder %s29_s20, %s227_s21  ;;  %p233_p7 = scmp.lt.s32.totalorder %s227_s21, %s227_s21 }
  0x13   :  { %p234_p8 = por %p233_p7, %p232_p6 }
  0x15   :  { %p235_p9 = pnand %p234_p8, %p228_p5 }
  0x17   :  { %238 = shalt.err (!%p235_p9)
}
  0x18   :  { %34 = dma.hbm_to_vmem [thread:$0]  %s318_s1, 256, %s29_s20, [#allocation7], %s266_s15, %s266_s15, %s267_s16  }
  0x19   :  { %259 = dma.done.wait [#allocation4], 128  }
  0x1a   :  { %260 = vsyncadd [#allocation4], 4294967168 }
  0x1b   :  { %261 = dma.done.wait [#allocation7], 256  }
  0x1c   :  { %262 = vsyncadd [#allocation7], 4294967040  ;;  %vm48_vm0 = vcmask 785408   ;;  %v269_v0 = vmov 0.0   ;;  %vm270_vm1 = vmmov 0   ;;  %v196_v1 = vld [vmem:[#allocation6 + $0x8] sm:$0xff]  }
  0x1d   :  { %49 = vst.msk [vmem:[#allocation2] sm:$0xff] %vm48_vm0, %v269_v0  ;;  %50 = vst.msk [vmem:[#allocation2 + $0x8] sm:$0xff] %vm48_vm0, %v269_v0  ;;  %181 = vmatprep.subr.bf16.mxu0 %v269_v0  ;;  %185 = vmatprep.mubr.msk.bf16.mxu0 %vm270_vm1, %v269_v0  ;;  %v197_v2 = vld [vmem:[#allocation6] sm:$0xff]   ;;  %v198_v3 = vld [vmem:[#allocation3] sm:$0xff]   ;;  %vm76_vm2 = vcmask 261120   ;;  %vm148_vm3 = vcmask 781312  }
  0x1e   :  { %182 = vmatpush3.bf16.msra.mxu0 %v196_v1  ;;  %v173_v12 = vld [vmem:[%s319_s2] ss:$0 sm:$0xff]  ;;  %s271_s24 = smov [#allocation8]  }
  0x1f   :  { %183 = vmatprep.subr.bf16.mxu0 %v269_v0  ;;  %s156_s25 = sshll.u32 %s271_s24, 4  ;;  %s157_s25 = int_to_ptr.vmem [resolvable:$true] %s156_s25 }
  0x20   :  { %s239_s26 = scalar_lea.vmem %s157_s25, 128  ;;  %p244_p11 = scmp.lt.s32.totalorder %s157_s25, %s157_s25 }
  0x21   :  { %p240_p10 = scmp.ne.s32.totalorder %s157_s25, %s239_s26  ;;  %p245_p12 = scmp.lt.s32.totalorder %s239_s26, %s239_s26 }
  0x22   :  { %184 = vmatpush3.bf16.msra.mxu0 %v197_v2 }
  0x23   :  { %p246_p13 = por %p245_p12, %p244_p11 }
  0x24   :  { %v51_v4 = vld [vmem:[#allocation2] sm:$0xff]  ;;  %v52_v8 = vld [vmem:[#allocation2 + $0x8] sm:$0xff] }
  0x25   :  { %186 = vmatmul.mubr.msk.bf16.vlgmr.msra.gmra.mxu0 %vm76_vm2, %v198_v3  ;;  %p247_p0 = pnand %p246_p13, %p240_p10 }
  0xe5   :  { %v114_v5 = vpop.f32.mrf.mxu0 }
  0xe6   :  { %v121_v6 = vadd.f32 %v114_v5, %v51_v4 }
  0xe7   :  { %v187_v7 = vpop.f32.mrf.mxu0 }
  0xe8   :  { %124 = vst.msk [vmem:[#allocation2] sm:$0xff] %vm48_vm0, %v121_v6 }
  0xe9   :  { %v117_v9 = vpop.f32.mrf.mxu0 }
  0xea   :  { %v122_v10 = vadd.f32 %v117_v9, %v52_v8 }
  0xeb   :  { %v188_v11 = vpop.f32.mrf.mxu0 }
  0xec   :  { %125 = vst.msk [vmem:[#allocation2 + $0x8] sm:$0xff] %vm48_vm0, %v122_v10 }
  0xef   :  { %v129_v13 = vld [vmem:[#allocation2] sm:$0xff] }
  0xf0   :  { %v138_v14 = vadd.f32 %v173_v12, %v129_v13 }
  0xf2   :  { %v176_v15 = vpack.c.bf16 %v138_v14, %v138_v14 }
  0xf3   :  { %v130_v16 = vld [vmem:[#allocation2 + $0x8] sm:$0xff] }
  0xf4   :  { %v139_v17 = vadd.f32 %v173_v12, %v130_v16  ;;  %149 = vst.msk [vmem:[#allocation8] sm:$0xf] %vm148_vm3, %v176_v15 }
  0xf6   :  { %v177_v18 = vpack.c.bf16 %v139_v17, %v139_v17 }
  0xf8   :  { %150 = vst.msk [vmem:[#allocation8 + $0x4] sm:$0xf] %vm148_vm3, %v177_v18 }
  0xf9   :  { %250 = shalt.err (!%p247_p0)
}
  0xfa   :  { %162 = dma.vmem_to_hbm [thread:$0]  %s157_s25, 128, %s320_s3, [#allocation5], %s266_s15, %s266_s15, %s267_s16  }
  0xfb   :  { %263 = dma.done.wait [#allocation5], 128  }
  0xfc   :  { %264 = vsyncadd [#allocation5], 4294967168 }
  0xfd   :  { %166 = vsyncpa [#allocation4], 1 }
  0xfe   :  { %167 = vsyncpa [#allocation7], 1 }
  0xff   :  { %168 = vsyncpa [#allocation5], 1 }

</bundles_post_ra>
